<compile_context>
chip_gen: v7x
topology: tpu7x:2x2x1
jax: 0.10.0
libtpu: 0.0.40
codegen_flags: <defaults>
</compile_context>

<pallas_src>
import math

import jax
import jax.numpy as jnp
from jax.experimental import pallas as pl
from jax.experimental.pallas import tpu as pltpu


def _cross_items_kernel(x_ref, rt_ref, w_ref, b_ref, o_ref):
    x = x_ref[...]                                                        # (tb, L)
    # Fused selector matmul: xi|xj in pair space, one MXU weight pass.
    xixj = jnp.dot(x, rt_ref[...], preferred_element_type=jnp.float32)   # (tb, 2*P)
    p = w_ref.shape[0]                                                    # pair_pad
    xi = xixj[:, :p]                                                      # 128-lane aligned split
    xj = xixj[:, p:]
    cross = xi * xj                                                       # (tb, P)  VPU
    # Folded Linear: one lane-dense MXU matmul, bias added once.
    o_ref[...] = (
        jnp.dot(cross, w_ref[...], preferred_element_type=jnp.float32)
        + b_ref[...]
    )


def prepare_cross_items_params(weight, bias, in_features):
    """Precompute (once per weight) the constant operands for the kernel.

    weight: (out_features, num_cross), bias: (out_features,).
    Returns (rt, w_pair, bias_pad, pair_pad, out_pad).
    """
    L = in_features
    out_features = weight.shape[0]
    num_cross = L * (L - 1) // 2
    pair_pad = ((num_cross + 127) // 128) * 128            # 120 -> 128
    out_pad = ((out_features + 127) // 128) * 128          # lane-dense output width

    # Row-major strict-upper-triangle pair order (matches torch bool-mask
    # indexing / jnp.triu_indices(L, k=1)): pair p is (rows[p], cols[p]).
    rows, cols = jnp.triu_indices(L, k=1)                  # (num_cross,)
    rows_p = jnp.full((pair_pad,), -1, dtype=jnp.int32).at[:num_cross].set(rows)
    cols_p = jnp.full((pair_pad,), -1, dtype=jnp.int32).at[:num_cross].set(cols)

    l_idx = jnp.arange(L)[:, None]
    r_pair = (l_idx == rows_p[None, :]).astype(jnp.float32)   # (L, pair_pad)
    t_pair = (l_idx == cols_p[None, :]).astype(jnp.float32)   # (L, pair_pad)
    rt = jnp.concatenate([r_pair, t_pair], axis=1)            # (L, 2*pair_pad)

    # Fold the Linear weight into pair space (gather, not scatter): zero rows
    # for the pad positions so they contribute nothing.
    w_t = weight.T.astype(jnp.float32)                        # (num_cross, out)
    w_pair = jnp.pad(w_t, ((0, pair_pad - num_cross),
                           (0, out_pad - out_features)))      # (pair_pad, out_pad)

    bias_pad = jnp.pad(bias.astype(jnp.float32),
                       (0, out_pad - out_features)).reshape(1, out_pad)

    return rt, w_pair, bias_pad, pair_pad, out_pad


def cross_items_forward(x, params, out_features, *, tb=None):
    """x: (B, L) f32.  params from prepare_cross_items_params."""
    rt, w_pair, bias_pad, pair_pad, out_pad = params
    B, L = x.shape

    # Batch block: multiple of 8 sublanes, capped so big batches get a real grid
    # that v7x can split across its two TensorCores.
    if tb is None:
        tb = min(max(B, 8), 256)
    tb = ((tb + 7) // 8) * 8
    b_pad = ((B + tb - 1) // tb) * tb
    n_blk = b_pad // tb

    x_p = x.astype(jnp.float32)
    if b_pad != B:
        x_p = jnp.pad(x_p, ((0, b_pad - B), (0, 0)))

    flops = (2 * b_pad * L * 2 * pair_pad          # fused selector matmul
             + b_pad * pair_pad                    # xi * xj
             + 2 * b_pad * pair_pad * out_pad      # folded Linear matmul
             + b_pad * out_pad)                    # bias add
    bytes_accessed = 4 * (x_p.size + rt.size + w_pair.size + bias_pad.size
                          + b_pad * out_pad)
    cost = pl.CostEstimate(flops=flops, transcendentals=0,
                           bytes_accessed=bytes_accessed)

    out_padded = pl.pallas_call(
        _cross_items_kernel,
        out_shape=jax.ShapeDtypeStruct((b_pad, out_pad), jnp.float32),
        grid_spec=pltpu.PrefetchScalarGridSpec(
            num_scalar_prefetch=0,
            grid=(n_blk,),
            in_specs=[
                pl.BlockSpec((tb, L), lambda b: (b, 0)),                 # x: batch-tiled
                pl.BlockSpec((L, 2 * pair_pad), lambda b: (0, 0)),       # RT: VMEM-resident
                pl.BlockSpec((pair_pad, out_pad), lambda b: (0, 0)),     # w_pair: VMEM-resident
                pl.BlockSpec((1, out_pad), lambda b: (0, 0)),            # bias: VMEM-resident
            ],
            out_specs=pl.BlockSpec((tb, out_pad), lambda b: (b, 0)),
        ),
        compiler_params=pltpu.CompilerParams(
            dimension_semantics=("parallel",)),
        cost_estimate=cost,
    )(x_p, rt, w_pair, bias_pad)

    return out_padded[:B, :out_features]


def cross_items_reference(x, weight, bias):
    """Pure-JAX reference replicating the PyTorch module exactly."""
    L = x.shape[1]
    cross = jnp.einsum('bl,bs->bls', x, x)
    rows, cols = jnp.triu_indices(L, k=1)
    cross_item = cross[:, rows, cols]                # (B, num_cross)
    return cross_item @ weight.T + bias


if __name__ == "__main__":
    # Module config (sampling=1 -> sampling_len == in_features).
    in_features = 16
    out_features = 32
    sampling = 1
    sampling_len = math.ceil(in_features / sampling)
    num_cross = sampling_len * (sampling_len - 1) // 2   # 120

    B = 8

    key = jax.random.PRNGKey(0)
    kx, kw, kb = jax.random.split(key, 3)

    x = jax.random.normal(kx, (B, in_features), dtype=jnp.float32)
    # Deterministic "nn.Linear"-style parameters.
    bound = 1.0 / math.sqrt(num_cross)
    weight = jax.random.uniform(kw, (out_features, num_cross),
                                dtype=jnp.float32, minval=-bound, maxval=bound)
    bias = jax.random.uniform(kb, (out_features,),
                              dtype=jnp.float32, minval=-bound, maxval=bound)

    # Weight folding done once (out of the per-call path).
    params = prepare_cross_items_params(weight, bias, in_features)
    params = jax.tree_util.tree_map(
        lambda a: jax.block_until_ready(a) if isinstance(a, jax.Array) else a, params)

    out = cross_items_forward(x, params, out_features)
    out = jax.block_until_ready(out)

    ref = cross_items_reference(x, weight, bias)
    assert out.shape == (B, out_features)
    assert jnp.allclose(out, ref, atol=1e-4, rtol=1e-4), float(jnp.max(jnp.abs(out - ref)))

    print("KERNEL_OK")
</pallas_src>

<mosaic_0001>
module attributes {stable_mosaic.version = 11 : i64} {
  func.func @_cross_items_kernel(%arg0: i32, %arg1: memref<8x16xf32, #tpu.memory_space<vmem>>, %arg2: memref<16x256xf32, #tpu.memory_space<vmem>>, %arg3: memref<128x128xf32, #tpu.memory_space<vmem>>, %arg4: memref<1x128xf32, #tpu.memory_space<vmem>>, %arg5: memref<8x128xf32, #tpu.memory_space<vmem>>) attributes {dimension_semantics = [#tpu.dimension_semantics<parallel>], iteration_bounds = array<i64: 1>, scalar_prefetch = 0 : i64, scratch_operands = 0 : i64, tpu.core_type = #tpu.core_type<tc>, window_params = [{transform_indices = @transform_0, window_bounds = array<i64: 8, 16>}, {pipeline_mode = #tpu.pipeline_mode<synchronous>, transform_indices = @transform_1, window_bounds = array<i64: 16, 256>}, {pipeline_mode = #tpu.pipeline_mode<synchronous>, transform_indices = @transform_2, window_bounds = array<i64: 128, 128>}, {pipeline_mode = #tpu.pipeline_mode<synchronous>, transform_indices = @transform_3, window_bounds = array<i64: 1, 128>}, {transform_indices = @transform_4, window_bounds = array<i64: 8, 128>}]} {
    %c0 = arith.constant 0 : index
    %c0_0 = arith.constant 0 : index
    %0 = vector.load %arg1[%c0, %c0_0] : memref<8x16xf32, #tpu.memory_space<vmem>>, vector<8x16xf32>
    %c0_1 = arith.constant 0 : index
    %c0_2 = arith.constant 0 : index
    %1 = vector.load %arg2[%c0_1, %c0_2] : memref<16x256xf32, #tpu.memory_space<vmem>>, vector<16x256xf32>
    %cst = arith.constant dense<0.000000e+00> : vector<8x256xf32>
    %2 = tpu.matmul %0, %1, %cst {dimension_numbers = #tpu.dot_dimension_numbers<[1], [0], [0], [1], [0, 0, 1, 1], [], []>} : vector<8x16xf32>, vector<16x256xf32>, vector<8x256xf32> -> vector<8x256xf32>
    %3 = vector.extract_strided_slice %2 {offsets = [0, 0], sizes = [8, 128], strides = [1, 1]} : vector<8x256xf32> to vector<8x128xf32>
    %4 = vector.extract_strided_slice %2 {offsets = [0, 128], sizes = [8, 128], strides = [1, 1]} : vector<8x256xf32> to vector<8x128xf32>
    %5 = arith.mulf %3, %4 : vector<8x128xf32>
    %c0_3 = arith.constant 0 : index
    %c0_4 = arith.constant 0 : index
    %6 = vector.load %arg3[%c0_3, %c0_4] : memref<128x128xf32, #tpu.memory_space<vmem>>, vector<128x128xf32>
    %cst_5 = arith.constant dense<0.000000e+00> : vector<8x128xf32>
    %7 = tpu.matmul %5, %6, %cst_5 {dimension_numbers = #tpu.dot_dimension_numbers<[1], [0], [0], [1], [0, 0, 1, 1], [], []>} : vector<8x128xf32>, vector<128x128xf32>, vector<8x128xf32> -> vector<8x128xf32>
    %c0_6 = arith.constant 0 : index
    %c0_7 = arith.constant 0 : index
    %8 = vector.load %arg4[%c0_6, %c0_7] : memref<1x128xf32, #tpu.memory_space<vmem>>, vector<1x128xf32>
    %9 = vector.broadcast %8 : vector<1x128xf32> to vector<8x128xf32>
    %10 = arith.addf %7, %9 : vector<8x128xf32>
    %c0_8 = arith.constant 0 : index
    %c0_9 = arith.constant 0 : index
    %11 = vector.load %arg5[%c0_8, %c0_9] : memref<8x128xf32, #tpu.memory_space<vmem>>, vector<8x128xf32>
    tpu.vector_store %arg5[%c0_8, %c0_9], %10 {strides = array<i32>} : memref<8x128xf32, #tpu.memory_space<vmem>>, vector<8x128xf32>,
    return
  }
  func.func @transform_0(%arg0: i32) -> (i32, i32) {
    %c0_i32 = arith.constant 0 : i32
    %c0_i32_0 = arith.constant 0 : i32
    return %arg0, %c0_i32 : i32, i32
  }
  func.func @transform_1(%arg0: i32) -> (i32, i32) {
    %c0_i32 = arith.constant 0 : i32
    %c0_i32_0 = arith.constant 0 : i32
    %c0_i32_1 = arith.constant 0 : i32
    return %c0_i32, %c0_i32_0 : i32, i32
  }
  func.func @transform_2(%arg0: i32) -> (i32, i32) {
    %c0_i32 = arith.constant 0 : i32
    %c0_i32_0 = arith.constant 0 : i32
    %c0_i32_1 = arith.constant 0 : i32
    return %c0_i32, %c0_i32_0 : i32, i32
  }
  func.func @transform_3(%arg0: i32) -> (i32, i32) {
    %c0_i32 = arith.constant 0 : i32
    %c0_i32_0 = arith.constant 0 : i32
    %c0_i32_1 = arith.constant 0 : i32
    return %c0_i32, %c0_i32_0 : i32, i32
  }
  func.func @transform_4(%arg0: i32) -> (i32, i32) {
    %c0_i32 = arith.constant 0 : i32
    %c0_i32_0 = arith.constant 0 : i32
    return %arg0, %c0_i32 : i32, i32
  }
}

</mosaic_0001>

<bundles_post_ra>
// kernel: tpu_custom_call.1
= control target key start
LH: loop header
LB: loop body
LE: loop exit
PB: predicated region body
PF: predicated region fallthrough
CT: control target
= control target key end

     0   :  { %9 = vsyncpa [#allocation3], 0  ;;  %s522_s0 = inlined_call_operand.hbm [shape: f32[8,16], index: 0, kind: input, shape index: {}]   ;;  %s523_s1 = inlined_call_operand.hbm [shape: f32[16,256], index: 1, kind: input, shape index: {}]   ;;  %s524_s2 = inlined_call_operand.hbm [shape: f32[128,128], index: 2, kind: input, shape index: {}]   ;;  %s525_s3 = inlined_call_operand.vmem [shape: f32[1,128], index: 3, kind: input, shape index: {}]   ;;  %s526_s4 = inlined_call_operand.hbm [shape: f32[8,128], index: 4, kind: output, shape index: {}]  }
   0x1   :  { %10 = vsyncpa [#allocation6], 0 }
   0x2   :  { %11 = vsyncpa [#allocation4], 0  ;;  %s435_s15 = smov [#allocation5]   ;;  %s341_s19 = scalar_lea.hbm %s523_s1, 512 }
   0x3   :  { %s27_s16 = sshll.u32 %s435_s15, 4  ;;  %p342_p0 = scmp.ne.s32.totalorder %s523_s1, %s341_s19  ;;  %s28_s16 = int_to_ptr.vmem [resolvable:$true] %s27_s16 }
   0x4   :  { %p345_p1 = scmp.lt.u32.totalorder %s341_s19, %s523_s1 }
   0x6   :  { %p347_p2 = pnand %p345_p1, %p342_p0 }
   0x8   :  { %350 = shalt.err (!%p347_p2)
}
   0x9   :  { %s351_s24 = scalar_lea.vmem %s28_s16, 512  ;;  %p356_p4 = scmp.lt.s32.totalorder %s28_s16, %s28_s16 }
   0xa   :  { %p352_p3 = scmp.ne.s32.totalorder %s28_s16, %s351_s24  ;;  %p357_p5 = scmp.lt.s32.totalorder %s351_s24, %s351_s24 }
   0xc   :  { %p358_p6 = por %p357_p5, %p356_p4 }
   0xe   :  { %p359_p7 = pnand %p358_p6, %p352_p3 }
  0x10   :  { %362 = shalt.err (!%p359_p7)
}
  0x11   :  { %s436_s25 = smov 256   ;;  %s437_s26 = smov 16  }
  0x12   :  { %33 = dma.hbm_to_vmem [thread:$0]  %s523_s1, 512, %s28_s16, [#allocation6], %s436_s25, %s436_s25, %s437_s26  }
  0x13   :  { %s438_s29 = smov [#allocation2]   ;;  %s439_s5 = smov [#allocation7]  }
  0x14   :  { %s18_s30 = sshll.u32 %s438_s29, 4  ;;  %s39_s6 = sshll.u32 %s439_s5, 4  ;;  %s19_s30 = int_to_ptr.vmem [resolvable:$true] %s18_s30  ;;  %s40_s6 = int_to_ptr.vmem [resolvable:$true] %s39_s6 }
  0x15   :  { %s363_s9 = scalar_lea.hbm %s522_s0, 128 }
  0x16   :  { %p364_p8 = scmp.ne.s32.totalorder %s522_s0, %s363_s9  ;;  %p367_p9 = scmp.lt.u32.totalorder %s363_s9, %s522_s0 }
  0x18   :  { %p369_p10 = pnand %p367_p9, %p364_p8 }
  0x1a   :  { %372 = shalt.err (!%p369_p10)
}
  0x1b   :  { %s373_s1 = scalar_lea.vmem %s19_s30, 128  ;;  %p378_p12 = scmp.lt.s32.totalorder %s19_s30, %s19_s30 }
  0x1c   :  { %p374_p11 = scmp.ne.s32.totalorder %s19_s30, %s373_s1  ;;  %p379_p13 = scmp.lt.s32.totalorder %s373_s1, %s373_s1 }
  0x1e   :  { %p380_p0 = por %p379_p13, %p378_p12 }
  0x20   :  { %p381_p1 = pnand %p380_p0, %p374_p11 }
  0x22   :  { %384 = shalt.err (!%p381_p1)
}
  0x23   :  { %21 = dma.hbm_to_vmem [thread:$0]  %s522_s0, 128, %s19_s30, [#allocation3]  }
  0x24   :  { %s385_s18 = scalar_lea.hbm %s524_s2, 2048 }
  0x25   :  { %p386_p2 = scmp.ne.s32.totalorder %s524_s2, %s385_s18  ;;  %p389_p3 = scmp.lt.u32.totalorder %s385_s18, %s524_s2 }
  0x27   :  { %p391_p4 = pnand %p389_p3, %p386_p2 }
  0x29   :  { %394 = shalt.err (!%p391_p4)
}
  0x2a   :  { %s395_s23 = scalar_lea.vmem %s40_s6, 2048  ;;  %p400_p6 = scmp.lt.s32.totalorder %s40_s6, %s40_s6 }
  0x2b   :  { %p396_p5 = scmp.ne.s32.totalorder %s40_s6, %s395_s23  ;;  %p401_p7 = scmp.lt.s32.totalorder %s395_s23, %s395_s23 }
  0x2d   :  { %p402_p8 = por %p401_p7, %p400_p6 }
  0x2f   :  { %p403_p9 = pnand %p402_p8, %p396_p5 }
  0x31   :  { %406 = shalt.err (!%p403_p9)
}
  0x32   :  { %s440_s0 = smov 128   ;;  %s441_s24 = smov 8  }
  0x33   :  { %45 = dma.hbm_to_vmem [thread:$0]  %s524_s2, 2048, %s40_s6, [#allocation6], %s440_s0, %s440_s0, %s441_s24  }
  0x34   :  { %429 = dma.done.wait [#allocation3], 128  }
  0x35   :  { %430 = vsyncadd [#allocation3], 4294967168 }
  0x36   :  { %431 = dma.done.wait [#allocation6], 2560  }
  0x37   :  { %432 = vsyncadd [#allocation6], 4294964736  ;;  %v442_v0 = vmov 0.0   ;;  %v443_v1 = vmov 0.0|0.0   ;;  %v59_v2 = vld [vmem:[#allocation5 + $0x8] sm:$0xff]  ;;  %v61_v3 = vld [vmem:[#allocation5 + $0x18] sm:$0xff] }
  0x38   :  { %130 = vmatprep.mubr.f32.mxu0 %v442_v0  ;;  %306 = vmatprep.subr.bf16.mxu1 %v443_v1  ;;  %v58_v4 = vld [vmem:[#allocation5] sm:$0xff]  ;;  %v302_v5 = vpack.c.bf16 %v61_v3, %v59_v2  ;;  %v60_v6 = vld [vmem:[#allocation5 + $0x10] sm:$0xff]  ;;  %v139_v9 = vld [vmem:[#allocation7 + $0x8] sm:$0xff]  ;;  %vm62_vm0 = vcmask 130048   ;;  %vm444_vm1 = vmmov 0   ;;  %s445_s28 = smov [#allocation8]  }
  0x39   :  { %v138_v7 = vld [vmem:[#allocation7] sm:$0xff]  ;;  %v304_v8 = vpack.c.bf16 %v60_v6, %v58_v4  ;;  %v140_v10 = vld [vmem:[#allocation7 + $0x10] sm:$0xff]  ;;  %v141_v11 = vld [vmem:[#allocation7 + $0x18] sm:$0xff]  ;;  %299 = vmatprep.mubr.msk.f32.mxu1 %vm444_vm1, %v442_v0  ;;  %s238_s29 = sshll.u32 %s445_s28, 4  ;;  %s239_s29 = int_to_ptr.vmem [resolvable:$true] %s238_s29 }
  0x3a   :  { %303 = vmatprep.subr.bf16.mxu0 %v302_v5  ;;  %v307_v12 = vpack.c.bf16 %v139_v9, %v138_v7  ;;  %v57_v13 = vld [vmem:[#allocation2] sm:$0xff]  ;;  %v310_v14 = vpack.c.bf16 %v141_v11, %v140_v10  ;;  %v142_v15 = vld [vmem:[#allocation7 + $0x20] sm:$0xff]  ;;  %v143_v16 = vld [vmem:[#allocation7 + $0x28] sm:$0xff]  ;;  %s407_s30 = scalar_lea.vmem %s239_s29, 128  ;;  %p412_p11 = scmp.lt.s32.totalorder %s239_s29, %s239_s29 }
  0x3b   :  { %305 = vmatpush1.bf16.msra.mxu0 %v304_v8  ;;  %v313_v17 = vpack.c.bf16 %v143_v16, %v142_v15  ;;  %v144_v18 = vld [vmem:[#allocation7 + $0x30] sm:$0xff]  ;;  %v145_v19 = vld [vmem:[#allocation7 + $0x38] sm:$0xff]  ;;  %v146_v21 = vld [vmem:[#allocation7 + $0x40] sm:$0xff]  ;;  %p408_p10 = scmp.ne.s32.totalorder %s239_s29, %s407_s30  ;;  %p413_p12 = scmp.lt.s32.totalorder %s407_s30, %s407_s30 }
  0x3c   :  { %308 = vmatpush3.bf16.msra.mxu1 %v307_v12  ;;  %v316_v20 = vpack.c.bf16 %v145_v19, %v144_v18  ;;  %v147_v22 = vld [vmem:[#allocation7 + $0x48] sm:$0xff]  ;;  %v148_v24 = vld [vmem:[#allocation7 + $0x50] sm:$0xff]  ;;  %v149_v25 = vld [vmem:[#allocation7 + $0x58] sm:$0xff] }
  0x3d   :  { %309 = vmatprep.subr.bf16.mxu1 %v443_v1  ;;  %v319_v23 = vpack.c.bf16 %v147_v22, %v146_v21  ;;  %v322_v26 = vpack.c.bf16 %v149_v25, %v148_v24  ;;  %v150_v27 = vld [vmem:[#allocation7 + $0x60] sm:$0xff]  ;;  %v151_v28 = vld [vmem:[#allocation7 + $0x68] sm:$0xff]  ;;  %v152_v30 = vld [vmem:[#allocation7 + $0x70] sm:$0xff]  ;;  %p414_p13 = por %p413_p12, %p412_p11 }
  0x3e   :  { %248 = vmatmul.mubr.msk.f32.vlgmr.msra.gmra.mrb[0].mxu0 %vm62_vm0, %v57_v13  ;;  %v325_v29 = vpack.c.bf16 %v151_v28, %v150_v27  ;;  %v153_v31 = vld [vmem:[#allocation7 + $0x78] sm:$0xff] }
  0x3f   :  { %v328_v32 = vpack.c.bf16 %v153_v31, %v152_v30  ;;  %v249_v36 = vld [vmem:[%s525_s3] ss:$0 sm:$0xff]  ;;  %p415_p0 = pnand %p414_p13, %p408_p10 }
  0x40   :  { %311 = vmatpush3.bf16.msra.mxu1 %v310_v14 }
  0x41   :  { %312 = vmatprep.subr.bf16.mxu1 %v443_v1 }
  0x44   :  { %314 = vmatpush3.bf16.msra.mxu1 %v313_v17 }
  0x45   :  { %315 = vmatprep.subr.bf16.mxu1 %v443_v1 }
  0x48   :  { %317 = vmatpush3.bf16.msra.mxu1 %v316_v20 }
  0x49   :  { %318 = vmatprep.subr.bf16.mxu1 %v443_v1 }
  0x4c   :  { %320 = vmatpush3.bf16.msra.mxu1 %v319_v23 }
  0x4d   :  { %321 = vmatprep.subr.bf16.mxu1 %v443_v1 }
  0x50   :  { %323 = vmatpush3.bf16.msra.mxu1 %v322_v26 }
  0x51   :  { %324 = vmatprep.subr.bf16.mxu1 %v443_v1 }
  0x54   :  { %326 = vmatpush3.bf16.msra.mxu1 %v325_v29 }
  0x55   :  { %327 = vmatprep.subr.bf16.mxu1 %v443_v1 }
  0x58   :  { %329 = vmatpush3.bf16.msra.mxu1 %v328_v32 }
 0x111   :  { %v132_v33 = vpop.f32.mrb[0].mxu0 }
 0x112   :  { %v134_v34 = vpop.f32.mrb[1].mxu0 }
 0x113   :  { %v137_v35 = vmul.f32 %v134_v34, %v132_v33 }
 0x115   :  { %300 = vmatmul.mubr.f32.vlgmr.msra.gmra.mrb[0].mxu1 %v137_v35 }
 0x1e8   :  { %v227_v37 = vpop.f32.mrb[0].mxu1 }
 0x1e9   :  { %v228_v38 = vadd.f32 %v249_v36, %v227_v37  ;;  %v301_v39 = vpop.f32.mrb[1].mxu1 }
 0x1eb   :  { %231 = vst [vmem:[#allocation8] sm:$0xff] %v228_v38 }
 0x1ec   :  { %418 = shalt.err (!%p415_p0)
}
 0x1ed   :  { %s419_s7 = scalar_lea.hbm %s526_s4, 128 }
 0x1ee   :  { %p420_p1 = scmp.ne.s32.totalorder %s526_s4, %s419_s7  ;;  %p423_p2 = scmp.lt.u32.totalorder %s419_s7, %s526_s4 }
 0x1f0   :  { %p425_p3 = pnand %p423_p2, %p420_p1 }
 0x1f2   :  { %428 = shalt.err (!%p425_p3)
}
 0x1f3   :  { %241 = dma.vmem_to_hbm [thread:$0]  %s239_s29, 128, %s526_s4, [#allocation4]  }
 0x1f4   :  { %433 = dma.done.wait [#allocation4], 128  }
 0x1f5   :  { %434 = vsyncadd [#allocation4], 4294967168 }
 0x1f6   :  { %245 = vsyncpa [#allocation3], 1 }
 0x1f7   :  { %246 = vsyncpa [#allocation6], 1 }
 0x1f8   :  { %247 = vsyncpa [#allocation4], 1 }

</bundles_post_ra>
